<compile_context>
chip_gen: v7x
topology: tpu7x:2x2x1
jax: 0.10.0
libtpu: 0.0.40
codegen_flags: <defaults>
</compile_context>

<pallas_src>
import functools

import jax
import jax.numpy as jnp
import numpy as np
from jax import lax
from jax.experimental import pallas as pl
from jax.experimental.pallas import tpu as pltpu

_LANES = 128
_TARGET_CLS_ROWS = 2048   # ~1 MiB f32 of logits per grid step
_ROW_ALIGN = 32           # keeps int8 / bf16 / f32 sublane tiling happy


def _round_up(x, m):
    return ((x + m - 1) // m) * m


# ----------------------------------------------------------------------------
# Pallas kernel: fused focal class loss + huber box loss partial sums per tile
# ----------------------------------------------------------------------------
def _loss_kernel(cls_ref, rep_ref, bo_ref, bt_ref, cls_out_ref, box_out_ref,
                 *, num_classes, alpha, gamma, delta, label_smoothing):
    i = pl.program_id(0)

    # ---------------- class (focal) loss, un-normalized tile sum ------------
    x = cls_ref[...].astype(jnp.float32)           # (Tc, 128) logits
    rep = rep_ref[...].astype(jnp.int32)           # (Tc, 128) class idx per slot
    tc, lanes = x.shape

    row = lax.broadcasted_iota(jnp.int32, (tc, lanes), 0)
    lane = lax.broadcasted_iota(jnp.int32, (tc, lanes), 1)
    flat = (i * tc + row) * lanes + lane
    c_idx = flat % num_classes                      # class index of this slot

    # one_hot(): 1.0 at the class index when target >= 0, else zeros.
    t = jnp.where((rep == c_idx) & (rep >= 0), 1.0, 0.0)
    valid = (rep != -2).astype(jnp.float32)         # ignore mask (also pads)

    # shared exp(-|x|) feeds both sigmoid and the stable BCE log term
    e = jnp.exp(-jnp.abs(x))
    r = 1.0 / (1.0 + e)                             # sigmoid(|x|)
    p = jnp.where(x >= 0.0, r, 1.0 - r)             # sigmoid(x)

    onem_t = 1.0 - t
    p_t = t * p + onem_t * (1.0 - p)
    alpha_f = t * alpha + onem_t * (1.0 - alpha)

    u = 1.0 - p_t
    g = float(gamma)
    if g == 1.0:
        mod = u
    elif g == 2.0:
        mod = u * u
    elif g == 1.5:
        mod = u * jnp.sqrt(u)                       # pow -> mul + sqrt
    elif g == 0.5:
        mod = jnp.sqrt(u)
    else:
        mod = jnp.power(u, g)

    if label_smoothing > 0.0:
        t_ce = t * (1.0 - label_smoothing) + 0.5 * label_smoothing
    else:
        t_ce = t
    # binary_cross_entropy_with_logits, numerically stable form
    ce = jnp.maximum(x, 0.0) - x * t_ce + jnp.log1p(e)

    cls_partial = jnp.sum(alpha_f * mod * ce * valid)

    # ---------------- box (huber) loss, un-normalized tile sum --------------
    bo = bo_ref[...].astype(jnp.float32)            # (Tb, 128)
    bt = bt_ref[...].astype(jnp.float32)
    mask = (bt != 0.0).astype(jnp.float32)
    abs_err = jnp.abs(bo - bt)
    quad = jnp.minimum(abs_err, delta)
    lin = abs_err - quad
    box_partial = jnp.sum((0.5 * quad * quad + delta * lin) * mask)

    # scalar partials -> distinct lane-dense (1, 8, 128) output blocks
    r8 = lax.broadcasted_iota(jnp.int32, (1, 8, lanes), 1)
    c8 = lax.broadcasted_iota(jnp.int32, (1, 8, lanes), 2)
    sel = (r8 == 0) & (c8 == 0)
    cls_out_ref[...] = jnp.where(sel, cls_partial, 0.0)
    box_out_ref[...] = jnp.where(sel, box_partial, 0.0)


def _detection_loss_sums(cls_flat, rep_flat, bo_flat, bt_flat, *, num_classes,
                         alpha, gamma, delta, label_smoothing):
    """Single fused pallas_call over all levels; returns un-normalized sums."""
    ec_rows = pl.cdiv(cls_flat.size, _LANES)
    eb_rows = pl.cdiv(bo_flat.size, _LANES)

    grid_n = max(1, pl.cdiv(ec_rows, _TARGET_CLS_ROWS))
    tc = _round_up(pl.cdiv(ec_rows, grid_n), _ROW_ALIGN)
    tb = _round_up(pl.cdiv(eb_rows, grid_n), _ROW_ALIGN)

    def pad2d(x, rows_per_tile, fill):
        total = grid_n * rows_per_tile * _LANES
        x = jnp.pad(x, (0, total - x.size), constant_values=fill)
        return x.reshape(grid_n * rows_per_tile, _LANES)

    cls2 = pad2d(cls_flat, tc, 0)
    rep2 = pad2d(rep_flat, tc, -2)   # padded slots are "ignore"
    bo2 = pad2d(bo_flat, tb, 0)
    bt2 = pad2d(bt_flat, tb, 0)      # target 0 -> mask 0

    kernel = functools.partial(
        _loss_kernel, num_classes=num_classes, alpha=alpha, gamma=gamma,
        delta=delta, label_smoothing=label_smoothing)

    cls_part, box_part = pl.pallas_call(
        kernel,
        out_shape=(jax.ShapeDtypeStruct((grid_n, 8, _LANES), jnp.float32),
                   jax.ShapeDtypeStruct((grid_n, 8, _LANES), jnp.float32)),
        grid=(grid_n,),
        in_specs=[
            pl.BlockSpec((tc, _LANES), lambda i: (i, 0)),   # logits
            pl.BlockSpec((tc, _LANES), lambda i: (i, 0)),   # repeated cls tgt
            pl.BlockSpec((tb, _LANES), lambda i: (i, 0)),   # box outputs
            pl.BlockSpec((tb, _LANES), lambda i: (i, 0)),   # box targets
        ],
        out_specs=(pl.BlockSpec((1, 8, _LANES), lambda i: (i, 0, 0)),
                   pl.BlockSpec((1, 8, _LANES), lambda i: (i, 0, 0))),
        compiler_params=pltpu.CompilerParams(
            dimension_semantics=("parallel",),
            vmem_limit_bytes=32 * 1024 * 1024),
    )(cls2, rep2, bo2, bt2)

    return jnp.sum(cls_part[:, 0, 0]), jnp.sum(box_part[:, 0, 0])


# ----------------------------------------------------------------------------
# DetectionLoss wrapper (mirrors DetectionLoss.forward / loss_fn)
# ----------------------------------------------------------------------------
class DetectionLossPallas:
    def __init__(self, num_classes, alpha, gamma, delta, box_loss_weight,
                 label_smoothing=0.0):
        self.num_classes = num_classes
        self.alpha = alpha
        self.gamma = gamma
        self.delta = delta
        self.box_loss_weight = box_loss_weight
        self.label_smoothing = label_smoothing
        # TODO(synk): box_loss_type != None (IoU-family losses with ragged
        # positive_indices gather + box decode) has no static-shape Pallas
        # equivalent here; only the default huber box-loss path is implemented.

    def __call__(self, cls_outputs, box_outputs, cls_targets, box_targets,
                 num_positives, anchors=None, positive_indices=None):
        C = self.num_classes
        tgt_dtype = jnp.int8 if C < 128 else jnp.int32

        cls_chunks, rep_chunks, bo_chunks, bt_chunks = [], [], [], []
        for l in range(len(cls_outputs)):
            # NCHW -> NHWC (matches .permute(0, 2, 3, 1) in the reference);
            # kept in the original conv dtype, cast to f32 inside the kernel.
            co = jnp.transpose(cls_outputs[l], (0, 2, 3, 1))   # (B,H,W,A*C)
            bo = jnp.transpose(box_outputs[l], (0, 2, 3, 1))   # (B,H,W,A*4)
            ct = cls_targets[l].astype(tgt_dtype)              # (B,H,W,A)
            bt = box_targets[l]                                # (B,H,W,A*4)
            rep = jnp.repeat(ct, C, axis=-1)                   # (B,H,W,A*C)

            cls_chunks.append(co.reshape(-1))
            rep_chunks.append(rep.reshape(-1))
            bo_chunks.append(bo.reshape(-1))
            bt_chunks.append(bt.reshape(-1))

        cls_flat = jnp.concatenate(cls_chunks)
        rep_flat = jnp.concatenate(rep_chunks)
        bo_flat = jnp.concatenate(bo_chunks)
        bt_flat = jnp.concatenate(bt_chunks)

        cls_sum, box_sum = _detection_loss_sums(
            cls_flat, rep_flat, bo_flat, bt_flat,
            num_classes=C, alpha=self.alpha, gamma=self.gamma,
            delta=self.delta, label_smoothing=self.label_smoothing)

        # normalization hoisted out of the kernel (applied once to scalars)
        npos = (jnp.sum(num_positives) + 1.0).astype(jnp.float32)
        cls_loss = cls_sum / npos
        box_loss = box_sum / (npos * 4.0)
        total = cls_loss + self.box_loss_weight * box_loss
        return total, cls_loss, box_loss


# ----------------------------------------------------------------------------
# Pure-JAX reference (mirrors the PyTorch code) for verification
# ----------------------------------------------------------------------------
def _ref_loss(cls_outputs, box_outputs, cls_targets, box_targets,
              num_positives, num_classes, alpha, gamma, delta,
              box_loss_weight, label_smoothing):
    npos = jnp.sum(num_positives) + 1.0
    cls_losses, box_losses = [], []
    for l in range(len(cls_outputs)):
        ct = cls_targets[l]
        oh = ((ct[..., None] == jnp.arange(num_classes)) &
              (ct[..., None] >= 0)).astype(jnp.float32)
        bs, h, w, a, _ = oh.shape
        oh2 = oh.reshape(bs, h, w, -1)
        co = jnp.transpose(cls_outputs[l], (0, 2, 3, 1)).astype(jnp.float32)

        p = jax.nn.sigmoid(co)
        t = oh2
        onem = 1.0 - t
        p_t = t * p + onem * (1.0 - p)
        af = t * alpha + onem * (1.0 - alpha)
        mf = (1.0 - p_t) ** gamma
        ts = t * (1.0 - label_smoothing) + 0.5 * label_smoothing \
            if label_smoothing > 0.0 else t
        ce = jnp.maximum(co, 0.0) - co * ts + jnp.log1p(jnp.exp(-jnp.abs(co)))
        cl = (1.0 / npos) * af * mf * ce
        cl = cl.reshape(bs, h, w, -1, num_classes) * (ct != -2)[..., None]
        cls_losses.append(jnp.sum(cl))

        bo = jnp.transpose(box_outputs[l], (0, 2, 3, 1)).astype(jnp.float32)
        bt = box_targets[l].astype(jnp.float32)
        mask = (bt != 0.0).astype(jnp.float32)
        ae = jnp.abs(bo - bt)
        q = jnp.minimum(ae, delta)
        bl = (0.5 * q * q + delta * (ae - q)) * mask
        box_losses.append(jnp.sum(bl) / (npos * 4.0))

    cls_loss = sum(cls_losses)
    box_loss = sum(box_losses)
    return cls_loss + box_loss_weight * box_loss, cls_loss, box_loss


# ----------------------------------------------------------------------------
if __name__ == "__main__":
    key = jax.random.PRNGKey(0)

    # small synthetic config
    num_classes = 8
    num_anchors = 4          # anchors per position
    alpha, gamma, delta = 0.25, 1.5, 0.1
    box_loss_weight = 50.0
    label_smoothing = 0.1
    batch = 2
    level_sizes = [(8, 8), (4, 4)]   # two feature levels

    cls_outputs, box_outputs, cls_targets, box_targets = [], [], [], []
    for (H, W) in level_sizes:
        key, k1, k2, k3, k4, k5 = jax.random.split(key, 6)
        cls_outputs.append(
            jax.random.normal(k1, (batch, num_anchors * num_classes, H, W),
                              jnp.float32))                          # NCHW
        box_outputs.append(
            jax.random.normal(k2, (batch, num_anchors * 4, H, W),
                              jnp.float32))                          # NCHW
        cls_targets.append(
            jax.random.randint(k3, (batch, H, W, num_anchors), -2, num_classes))
        bt = jax.random.normal(k4, (batch, H, W, num_anchors * 4), jnp.float32)
        keep = jax.random.bernoulli(k5, 0.6, bt.shape)
        box_targets.append(bt * keep)                                # some zeros

    num_positives = jnp.array([3.0, 5.0], jnp.float32)

    loss_mod = DetectionLossPallas(num_classes, alpha, gamma, delta,
                                   box_loss_weight, label_smoothing)
    loss_jit = jax.jit(lambda co, bo, ct, bt, npos: loss_mod(co, bo, ct, bt, npos))

    total, cls_l, box_l = loss_jit(cls_outputs, box_outputs, cls_targets,
                                   box_targets, num_positives)
    jax.block_until_ready(total)

    ref_total, ref_cls, ref_box = _ref_loss(
        cls_outputs, box_outputs, cls_targets, box_targets, num_positives,
        num_classes, alpha, gamma, delta, box_loss_weight, label_smoothing)

    np.testing.assert_allclose(np.asarray(cls_l), np.asarray(ref_cls),
                               rtol=1e-3, atol=1e-3)
    np.testing.assert_allclose(np.asarray(box_l), np.asarray(ref_box),
                               rtol=1e-3, atol=1e-3)
    np.testing.assert_allclose(np.asarray(total), np.asarray(ref_total),
                               rtol=1e-3, atol=1e-3)
    print("KERNEL_OK")
</pallas_src>

<mosaic_0001>
module attributes {stable_mosaic.version = 11 : i64} {
  func.func @_loss_kernel(%arg0: i32, %arg1: memref<64x128xf32, #tpu.memory_space<vmem>>, %arg2: memref<64x128xi8, #tpu.memory_space<vmem>>, %arg3: memref<32x128xf32, #tpu.memory_space<vmem>>, %arg4: memref<32x128xf32, #tpu.memory_space<vmem>>, %arg5: memref<1x8x128xf32, #tpu.memory_space<vmem>>, %arg6: memref<1x8x128xf32, #tpu.memory_space<vmem>>) attributes {dimension_semantics = [#tpu.dimension_semantics<parallel>], iteration_bounds = array<i64: 1>, scalar_prefetch = 0 : i64, scratch_operands = 0 : i64, tpu.core_type = #tpu.core_type<tc>, window_params = [{transform_indices = @transform_0, window_bounds = array<i64: 64, 128>}, {transform_indices = @transform_1, window_bounds = array<i64: 64, 128>}, {transform_indices = @transform_2, window_bounds = array<i64: 32, 128>}, {transform_indices = @transform_3, window_bounds = array<i64: 32, 128>}, {transform_indices = @transform_4, window_bounds = array<i64: 1, 8, 128>}, {transform_indices = @transform_5, window_bounds = array<i64: 1, 8, 128>}]} {
    %c0 = arith.constant 0 : index
    %c0_0 = arith.constant 0 : index
    %0 = vector.load %arg1[%c0, %c0_0] : memref<64x128xf32, #tpu.memory_space<vmem>>, vector<64x128xf32>
    %c0_1 = arith.constant 0 : index
    %c0_2 = arith.constant 0 : index
    %1 = vector.load %arg2[%c0_1, %c0_2] : memref<64x128xi8, #tpu.memory_space<vmem>>, vector<64x128xi8>
    %2 = arith.extsi %1 : vector<64x128xi8> to vector<64x128xi32>
    %3 = tpu.iota {dimensions = array<i32: 0>} : vector<64x128xi32>
    %4 = tpu.iota {dimensions = array<i32: 1>} : vector<64x128xi32>
    %c64_i32 = arith.constant 64 : i32
    %5 = arith.muli %arg0, %c64_i32 : i32
    %6 = vector.broadcast %5 : i32 to vector<64x128xi32>
    %7 = arith.addi %6, %3 : vector<64x128xi32>
    %c128_i32 = arith.constant 128 : i32
    %8 = vector.broadcast %c128_i32 : i32 to vector<64x128xi32>
    %9 = arith.muli %7, %8 : vector<64x128xi32>
    %10 = arith.addi %9, %4 : vector<64x128xi32>
    %c8_i32 = arith.constant 8 : i32
    %c0_i32 = arith.constant 0 : i32
    %11 = arith.cmpi eq, %c8_i32, %c0_i32 : i32
    %c1_i32 = arith.constant 1 : i32
    %12 = arith.select %11, %c1_i32, %c8_i32 : i32
    %13 = vector.broadcast %12 : i32 to vector<64x128xi32>
    %14 = arith.remsi %10, %13 : vector<64x128xi32>
    %c0_i32_3 = arith.constant 0 : i32
    %15 = vector.broadcast %c0_i32_3 : i32 to vector<64x128xi32>
    %16 = arith.cmpi ne, %14, %15 : vector<64x128xi32>
    %c0_i32_4 = arith.constant 0 : i32
    %17 = vector.broadcast %c0_i32_4 : i32 to vector<64x128xi32>
    %18 = arith.cmpi slt, %14, %17 : vector<64x128xi32>
    %c0_i32_5 = arith.constant 0 : i32
    %19 = arith.cmpi slt, %12, %c0_i32_5 : i32
    %20 = vector.broadcast %19 : i1 to vector<64x128xi1>
    %21 = vector.broadcast %20 : vector<64x128xi1> to vector<64x128xi1>
    %22 = arith.xori %18, %21 : vector<64x128xi1>
    %23 = arith.andi %22, %16 : vector<64x128xi1>
    %24 = vector.broadcast %12 : i32 to vector<64x128xi32>
    %25 = arith.addi %14, %24 : vector<64x128xi32>
    %26 = arith.select %23, %25, %14 : vector<64x128xi1>, vector<64x128xi32>
    %27 = arith.cmpi eq, %2, %26 : vector<64x128xi32>
    %c0_i32_6 = arith.constant 0 : i32
    %28 = vector.broadcast %c0_i32_6 : i32 to vector<64x128xi32>
    %29 = arith.cmpi sge, %2, %28 : vector<64x128xi32>
    %30 = arith.andi %27, %29 : vector<64x128xi1>
    %cst = arith.constant 1.000000e+00 : f32
    %cst_7 = arith.constant 0.000000e+00 : f32
    %31 = vector.broadcast %cst : f32 to vector<64x128xf32>
    %32 = vector.broadcast %cst_7 : f32 to vector<64x128xf32>
    %33 = arith.select %30, %31, %32 : vector<64x128xi1>, vector<64x128xf32>
    %c-2_i32 = arith.constant -2 : i32
    %34 = vector.broadcast %c-2_i32 : i32 to vector<64x128xi32>
    %35 = arith.cmpi ne, %2, %34 : vector<64x128xi32>
    %36 = arith.extui %35 : vector<64x128xi1> to vector<64x128xi32>
    %37 = arith.sitofp %36 : vector<64x128xi32> to vector<64x128xf32>
    %38 = math.absf %0 : vector<64x128xf32>
    %cst_8 = arith.constant 0.000000e+00 : f32
    %39 = vector.broadcast %cst_8 : f32 to vector<64x128xf32>
    %40 = arith.subf %39, %38 : vector<64x128xf32>
    %41 = math.exp %40 : vector<64x128xf32>
    %cst_9 = arith.constant 1.000000e+00 : f32
    %42 = vector.broadcast %cst_9 : f32 to vector<64x128xf32>
    %43 = arith.addf %42, %41 : vector<64x128xf32>
    %cst_10 = arith.constant 1.000000e+00 : f32
    %44 = vector.broadcast %cst_10 : f32 to vector<64x128xf32>
    %45 = arith.divf %44, %43 : vector<64x128xf32>
    %cst_11 = arith.constant 0.000000e+00 : f32
    %46 = vector.broadcast %cst_11 : f32 to vector<64x128xf32>
    %47 = arith.cmpf oge, %0, %46 : vector<64x128xf32>
    %cst_12 = arith.constant 1.000000e+00 : f32
    %48 = vector.broadcast %cst_12 : f32 to vector<64x128xf32>
    %49 = arith.subf %48, %45 : vector<64x128xf32>
    %50 = arith.select %47, %45, %49 : vector<64x128xi1>, vector<64x128xf32>
    %cst_13 = arith.constant 1.000000e+00 : f32
    %51 = vector.broadcast %cst_13 : f32 to vector<64x128xf32>
    %52 = arith.subf %51, %33 : vector<64x128xf32>
    %53 = arith.mulf %33, %50 : vector<64x128xf32>
    %cst_14 = arith.constant 1.000000e+00 : f32
    %54 = vector.broadcast %cst_14 : f32 to vector<64x128xf32>
    %55 = arith.subf %54, %50 : vector<64x128xf32>
    %56 = arith.mulf %52, %55 : vector<64x128xf32>
    %57 = arith.addf %53, %56 : vector<64x128xf32>
    %cst_15 = arith.constant 2.500000e-01 : f32
    %58 = vector.broadcast %cst_15 : f32 to vector<64x128xf32>
    %59 = arith.mulf %33, %58 : vector<64x128xf32>
    %cst_16 = arith.constant 7.500000e-01 : f32
    %60 = vector.broadcast %cst_16 : f32 to vector<64x128xf32>
    %61 = arith.mulf %52, %60 : vector<64x128xf32>
    %62 = arith.addf %59, %61 : vector<64x128xf32>
    %cst_17 = arith.constant 1.000000e+00 : f32
    %63 = vector.broadcast %cst_17 : f32 to vector<64x128xf32>
    %64 = arith.subf %63, %57 : vector<64x128xf32>
    %65 = math.sqrt %64 : vector<64x128xf32>
    %66 = arith.mulf %64, %65 : vector<64x128xf32>
    %cst_18 = arith.constant 0.899999976 : f32
    %67 = vector.broadcast %cst_18 : f32 to vector<64x128xf32>
    %68 = arith.mulf %33, %67 : vector<64x128xf32>
    %cst_19 = arith.constant 5.000000e-02 : f32
    %69 = vector.broadcast %cst_19 : f32 to vector<64x128xf32>
    %70 = arith.addf %68, %69 : vector<64x128xf32>
    %cst_20 = arith.constant 0.000000e+00 : f32
    %71 = vector.broadcast %cst_20 : f32 to vector<64x128xf32>
    %72 = arith.maximumf %0, %71 : vector<64x128xf32>
    %73 = arith.mulf %0, %70 : vector<64x128xf32>
    %74 = arith.subf %72, %73 : vector<64x128xf32>
    %75 = math.log1p %41 : vector<64x128xf32>
    %76 = arith.addf %74, %75 : vector<64x128xf32>
    %77 = arith.mulf %62, %66 : vector<64x128xf32>
    %78 = arith.mulf %77, %76 : vector<64x128xf32>
    %79 = arith.mulf %78, %37 : vector<64x128xf32>
    %80 = vector.shape_cast %79 : vector<64x128xf32> to vector<1x64x128xf32>
    %cst_21 = arith.constant dense<0.000000e+00> : vector<1xf32>
    %81 = vector.multi_reduction <add>, %80, %cst_21 [1, 2] : vector<1x64x128xf32> to vector<1xf32>
    %82 = vector.shape_cast %81 : vector<1xf32> to vector<1x1x1xf32>
    %83 = vector.extract %82[0, 0, 0] : f32 from vector<1x1x1xf32>
    %c0_22 = arith.constant 0 : index
    %c0_23 = arith.constant 0 : index
    %84 = vector.load %arg3[%c0_22, %c0_23] : memref<32x128xf32, #tpu.memory_space<vmem>>, vector<32x128xf32>
    %c0_24 = arith.constant 0 : index
    %c0_25 = arith.constant 0 : index
    %85 = vector.load %arg4[%c0_24, %c0_25] : memref<32x128xf32, #tpu.memory_space<vmem>>, vector<32x128xf32>
    %cst_26 = arith.constant 0.000000e+00 : f32
    %86 = vector.broadcast %cst_26 : f32 to vector<32x128xf32>
    %87 = arith.cmpf one, %85, %86 : vector<32x128xf32>
    %88 = arith.extui %87 : vector<32x128xi1> to vector<32x128xi32>
    %89 = arith.sitofp %88 : vector<32x128xi32> to vector<32x128xf32>
    %90 = arith.subf %84, %85 : vector<32x128xf32>
    %91 = math.absf %90 : vector<32x128xf32>
    %cst_27 = arith.constant 1.000000e-01 : f32
    %92 = vector.broadcast %cst_27 : f32 to vector<32x128xf32>
    %93 = arith.minimumf %91, %92 : vector<32x128xf32>
    %94 = arith.subf %91, %93 : vector<32x128xf32>
    %cst_28 = arith.constant 5.000000e-01 : f32
    %95 = vector.broadcast %cst_28 : f32 to vector<32x128xf32>
    %96 = arith.mulf %95, %93 : vector<32x128xf32>
    %97 = arith.mulf %96, %93 : vector<32x128xf32>
    %cst_29 = arith.constant 1.000000e-01 : f32
    %98 = vector.broadcast %cst_29 : f32 to vector<32x128xf32>
    %99 = arith.mulf %98, %94 : vector<32x128xf32>
    %100 = arith.addf %97, %99 : vector<32x128xf32>
    %101 = arith.mulf %100, %89 : vector<32x128xf32>
    %102 = vector.shape_cast %101 : vector<32x128xf32> to vector<1x32x128xf32>
    %cst_30 = arith.constant dense<0.000000e+00> : vector<1xf32>
    %103 = vector.multi_reduction <add>, %102, %cst_30 [1, 2] : vector<1x32x128xf32> to vector<1xf32>
    %104 = vector.shape_cast %103 : vector<1xf32> to vector<1x1x1xf32>
    %105 = vector.extract %104[0, 0, 0] : f32 from vector<1x1x1xf32>
    %106 = tpu.iota {dimensions = array<i32: 1>} : vector<1x8x128xi32>
    %107 = tpu.iota {dimensions = array<i32: 2>} : vector<1x8x128xi32>
    %c0_i32_31 = arith.constant 0 : i32
    %108 = vector.broadcast %c0_i32_31 : i32 to vector<1x8x128xi32>
    %109 = arith.cmpi eq, %106, %108 : vector<1x8x128xi32>
    %c0_i32_32 = arith.constant 0 : i32
    %110 = vector.broadcast %c0_i32_32 : i32 to vector<1x8x128xi32>
    %111 = arith.cmpi eq, %107, %110 : vector<1x8x128xi32>
    %112 = arith.andi %109, %111 : vector<1x8x128xi1>
    %cst_33 = arith.constant 0.000000e+00 : f32
    %113 = vector.broadcast %83 : f32 to vector<1x8x128xf32>
    %114 = vector.broadcast %cst_33 : f32 to vector<1x8x128xf32>
    %115 = arith.select %112, %113, %114 : vector<1x8x128xi1>, vector<1x8x128xf32>
    %c0_34 = arith.constant 0 : index
    %c0_35 = arith.constant 0 : index
    %c0_36 = arith.constant 0 : index
    %116 = vector.load %arg5[%c0_34, %c0_35, %c0_36] : memref<1x8x128xf32, #tpu.memory_space<vmem>>, vector<1x8x128xf32>
    tpu.vector_store %arg5[%c0_34, %c0_35, %c0_36], %115 {strides = array<i32>} : memref<1x8x128xf32, #tpu.memory_space<vmem>>, vector<1x8x128xf32>,
    %cst_37 = arith.constant 0.000000e+00 : f32
    %117 = vector.broadcast %105 : f32 to vector<1x8x128xf32>
    %118 = vector.broadcast %cst_37 : f32 to vector<1x8x128xf32>
    %119 = arith.select %112, %117, %118 : vector<1x8x128xi1>, vector<1x8x128xf32>
    %c0_38 = arith.constant 0 : index
    %c0_39 = arith.constant 0 : index
    %c0_40 = arith.constant 0 : index
    %120 = vector.load %arg6[%c0_38, %c0_39, %c0_40] : memref<1x8x128xf32, #tpu.memory_space<vmem>>, vector<1x8x128xf32>
    tpu.vector_store %arg6[%c0_38, %c0_39, %c0_40], %119 {strides = array<i32>} : memref<1x8x128xf32, #tpu.memory_space<vmem>>, vector<1x8x128xf32>,
    return
  }
  func.func @transform_0(%arg0: i32) -> (i32, i32) {
    %c0_i32 = arith.constant 0 : i32
    %c0_i32_0 = arith.constant 0 : i32
    return %arg0, %c0_i32 : i32, i32
  }
  func.func @transform_1(%arg0: i32) -> (i32, i32) {
    %c0_i32 = arith.constant 0 : i32
    %c0_i32_0 = arith.constant 0 : i32
    return %arg0, %c0_i32 : i32, i32
  }
  func.func @transform_2(%arg0: i32) -> (i32, i32) {
    %c0_i32 = arith.constant 0 : i32
    %c0_i32_0 = arith.constant 0 : i32
    return %arg0, %c0_i32 : i32, i32
  }
  func.func @transform_3(%arg0: i32) -> (i32, i32) {
    %c0_i32 = arith.constant 0 : i32
    %c0_i32_0 = arith.constant 0 : i32
    return %arg0, %c0_i32 : i32, i32
  }
  func.func @transform_4(%arg0: i32) -> (i32, i32, i32) {
    %c0_i32 = arith.constant 0 : i32
    %c0_i32_0 = arith.constant 0 : i32
    %c0_i32_1 = arith.constant 0 : i32
    return %arg0, %c0_i32, %c0_i32_0 : i32, i32, i32
  }
  func.func @transform_5(%arg0: i32) -> (i32, i32, i32) {
    %c0_i32 = arith.constant 0 : i32
    %c0_i32_0 = arith.constant 0 : i32
    %c0_i32_1 = arith.constant 0 : i32
    return %arg0, %c0_i32, %c0_i32_0 : i32, i32, i32
  }
}

</mosaic_0001>

<bundles_post_ra>
// kernel: _lambda_.1
= control target key start
LH: loop header
LB: loop body
LE: loop exit
PB: predicated region body
PF: predicated region fallthrough
CT: control target
= control target key end

     0   :  { %v37_v0 = vlaneseq  ;;  %s1671_s1 = inlined_call_operand.vmem [shape: s8[64,128], index: 1, kind: input, shape index: {}]   ;;  %s1672_s0 = inlined_call_operand.vmem [shape: f32[64,128], index: 0, kind: input, shape index: {}]   ;;  %s1673_s2 = inlined_call_operand.vmem [shape: f32[32,128], index: 2, kind: input, shape index: {}]   ;;  %s1674_s3 = inlined_call_operand.vmem [shape: f32[32,128], index: 3, kind: input, shape index: {}]   ;;  %s1675_s4 = inlined_call_operand.vmem [shape: f32[1,8,128], index: 4, kind: output, shape index: {0}]   ;;  %s1676_s5 = inlined_call_operand.vmem [shape: f32[1,8,128], index: 5, kind: output, shape index: {1}]  }
   0x1   :  { %v27_v13 = vld [vmem:[%s1671_s1] sm:$0xff] }
   0x2   :  { %v807_v1 = vshrl.u32 %v37_v0, 7  ;;  %v809_v2 = vand.u32 127, %v37_v0  ;;  %v827_v23 = vunpack.c.0.s8 %v27_v13  ;;  %v830_v27 = vunpack.c.1.s8 %v27_v13 }
   0x3   :  { %v835_v31 = vunpack.c.2.s8 %v27_v13  ;;  %v841_v58 = vunpack.c.3.s8 %v27_v13 }
   0x4   :  { %1700 = vst [vmem:[#allocation2_spill] sm:$0xff] %v807_v1  ;;  %1701 = vst [vmem:[#allocation3_spill] sm:$0xff] %v809_v2  ;;  %v39_v3 = vadd.s32 8, %v807_v1  ;;  %v40_v4 = vadd.s32 16, %v807_v1  ;;  %v41_v5 = vadd.s32 24, %v807_v1  ;;  %v42_v6 = vadd.s32 32, %v807_v1 }
   0x5   :  { %v43_v7 = vadd.s32 40, %v807_v1  ;;  %v44_v8 = vadd.s32 48, %v807_v1  ;;  %v58_v9 = vmul.u32 128, %v807_v1  ;;  %v45_v10 = vadd.s32 56, %v807_v1 }
   0x6   :  { %v59_v11 = vmul.u32 128, %v39_v3  ;;  %v60_v12 = vmul.u32 128, %v40_v4 }
   0x7   :  { %v61_v14 = vmul.u32 128, %v41_v5  ;;  %v62_v15 = vmul.u32 128, %v42_v6  ;;  %v66_v16 = vadd.s32 %v58_v9, %v809_v2  ;;  %v28_v5 = vld [vmem:[%s1671_s1 + $0x8] sm:$0xff] }
   0x8   :  { %v63_v17 = vmul.u32 128, %v43_v7  ;;  %v64_v18 = vmul.u32 128, %v44_v8  ;;  %v67_v19 = vadd.s32 %v59_v11, %v809_v2  ;;  %v68_v20 = vadd.s32 %v60_v12, %v809_v2 }
   0x9   :  { %v69_v21 = vadd.s32 %v61_v14, %v809_v2  ;;  %v70_v22 = vadd.s32 %v62_v15, %v809_v2  ;;  %v65_v24 = vmul.u32 128, %v45_v10  ;;  %v75_v26 = vsub.s32 0, %v66_v16 }
   0xa   :  { %v71_v25 = vadd.s32 %v63_v17, %v809_v2  ;;  %v833_v28 = vadd.s32 %v64_v18, %v809_v2  ;;  %v82_v29 = vsub.s32 0, %v67_v19  ;;  %v89_v30 = vsub.s32 0, %v68_v20 }
   0xb   :  { %vm74_vm0 = vcmp.lt.s32.totalorder %v66_v16, 0  ;;  %v687_v32 = vmin.u32 %v75_v26, %v66_v16  ;;  %v96_v33 = vsub.s32 0, %v69_v21  ;;  %vm81_vm1 = vcmp.lt.s32.totalorder %v67_v19, 0 }
   0xc   :  { %v688_v34 = vmin.u32 %v82_v29, %v67_v19  ;;  %v689_v35 = vmin.u32 %v89_v30, %v68_v20  ;;  %v103_v36 = vsub.s32 0, %v70_v22  ;;  %v73_v37 = vadd.s32 %v65_v24, %v809_v2 }
   0xd   :  { %v78_v38 = vand.u32 7, %v687_v32  ;;  %v690_v39 = vmin.u32 %v96_v33, %v69_v21  ;;  %v110_v40 = vsub.s32 0, %v71_v25  ;;  %v117_v44 = vsub.s32 0, %v833_v28  ;;  %v924_v32 = vld [vmem:[%s1672_s0] sm:$0xff] }
   0xe   :  { %v85_v41 = vand.u32 7, %v688_v34  ;;  %v92_v42 = vand.u32 7, %v689_v35  ;;  %v691_v43 = vmin.u32 %v103_v36, %v70_v22  ;;  %vm88_vm2 = vcmp.lt.s32.totalorder %v68_v20, 0 }
   0xf   :  { %v79_v45 = vsub.s32 0, %v78_v38  ;;  %v99_v46 = vand.u32 7, %v690_v39  ;;  %v692_v47 = vmin.u32 %v110_v40, %v71_v25  ;;  %v693_v51 = vmin.u32 %v117_v44, %v833_v28  ;;  %v1131_v40 = vld [vmem:[%s1674_s3] sm:$0xff] }
  0x10   :  { %v86_v48 = vsub.s32 0, %v85_v41  ;;  %v93_v49 = vsub.s32 0, %v92_v42  ;;  %v106_v50 = vand.u32 7, %v691_v43  ;;  %vm95_vm3 = vcmp.lt.s32.totalorder %v69_v21, 0  ;;  %1744 = vst [vmem:[#allocation8_spill] sm:$0xff] %v1131_v40 }
  0x11   :  { %v100_v52 = vsub.s32 0, %v99_v46  ;;  %v113_v53 = vand.u32 7, %v692_v47  ;;  %v124_v54 = vsub.s32 0, %v73_v37  ;;  %v80_v55 = vsel %vm74_vm0, %v79_v45, %v78_v38 }
  0x12   :  { %vm102_vm4 = vcmp.lt.s32.totalorder %v70_v22, 0  ;;  %v107_v56 = vsub.s32 0, %v106_v50  ;;  %v120_v57 = vand.u32 7, %v693_v51  ;;  %v87_v59 = vsel %vm81_vm1, %v86_v48, %v85_v41  ;;  %v988_v48 = vld [vmem:[%s1672_s0 + $0x10] sm:$0xff] }
  0x13   :  { %v114_v60 = vsub.s32 0, %v113_v53  ;;  %v694_v61 = vmin.u32 %v124_v54, %v73_v37  ;;  %v94_v62 = vsel %vm88_vm2, %v93_v49, %v92_v42  ;;  %v845_v63 = vsel %vm95_vm3, %v100_v52, %v99_v46  ;;  %v963_v42 = vld [vmem:[%s1672_s0 + $0x8] sm:$0xff]  ;;  %v993_v49 = vld [vmem:[%s1672_s0 + $0x18] sm:$0xff]  ;;  %v1010_v52 = vld [vmem:[%s1672_s0 + $0x20] sm:$0xff] }
  0x14   :  { %vm109_vm5 = vcmp.lt.s32.totalorder %v71_v25, 0  ;;  %vm116_vm6 = vcmp.lt.s32.totalorder %v833_v28, 0  ;;  %v848_v0 = vsel %vm102_vm4, %v107_v56, %v106_v50  ;;  %v121_v3 = vsub.s32 0, %v120_v57  ;;  %v1028_v56 = vld [vmem:[%s1672_s0 + $0x30] sm:$0xff] }
  0x15   :  { %v127_v4 = vand.u32 7, %v694_v61  ;;  %vm130_vm7 = vcmp.ne.s32.totalorder %v80_v55, 0  ;;  %vm123_vm8 = vcmp.lt.s32.totalorder %v73_v37, 0  ;;  %vm131_vm9 = vcmp.ne.s32.totalorder %v87_v59, 0 }
  0x16   :  { %vm138_vm10 = vcmp.lt.s32.totalorder %v80_v55, 0  ;;  %vm139_vm11 = vcmp.lt.s32.totalorder %v87_v59, 0  ;;  %v115_v6 = vsel %vm109_vm5, %v114_v60, %v113_v53  ;;  %vm132_vm12 = vcmp.ne.s32.totalorder %v94_v62, 0  ;;  %v1015_v53 = vld [vmem:[%s1672_s0 + $0x28] sm:$0xff] }
  0x17   :  { %v128_v7 = vsub.s32 0, %v127_v4  ;;  %vm140_vm13 = vcmp.lt.s32.totalorder %v94_v62, 0  ;;  %vm133_vm14 = vcmp.ne.s32.totalorder %v845_v63, 0  ;;  %vm134_vm15 = vcmp.ne.s32.totalorder %v848_v0, 0  ;;  %vm856_vm1 = vmand %vm138_vm10, %vm130_vm7 }
  0x18   :  { %vm141_vm0 = vcmp.lt.s32.totalorder %v845_v63, 0  ;;  %v154_v9 = vadd.s32 8, %v80_v55  ;;  %v862_v10 = vsel %vm116_vm6, %v121_v3, %v120_v57  ;;  %vm142_vm2 = vcmp.lt.s32.totalorder %v848_v0, 0  ;;  %vm866_vm3 = vmand %vm139_vm11, %vm131_vm9  ;;  %v1033_v57 = vld [vmem:[%s1672_s0 + $0x38] sm:$0xff] }
  0x19   :  { %v155_v12 = vadd.s32 8, %v87_v59  ;;  %v156_v13 = vadd.s32 8, %v94_v62  ;;  %v870_v14 = vunpack.c.0.s8 %v28_v5  ;;  %v873_v15 = vsel %vm123_vm8, %v128_v7, %v127_v4  ;;  %vm877_vm6 = vmand %vm140_vm13, %vm132_vm12 }
  0x1a   :  { %vm135_vm4 = vcmp.ne.s32.totalorder %v115_v6, 0  ;;  %vm143_vm5 = vcmp.lt.s32.totalorder %v115_v6, 0  ;;  %v881_v17 = vunpack.c.1.s8 %v28_v5  ;;  %vm885_vm7 = vmand %vm141_vm0, %vm133_vm14  ;;  %v157_v19 = vadd.s32 8, %v845_v63 }
  0x1b   :  { %v158_v20 = vadd.s32 8, %v848_v0  ;;  %v162_v21 = vsel %vm856_vm1, %v154_v9, %v80_v55  ;;  %vm136_vm8 = vcmp.ne.s32.totalorder %v862_v10, 0  ;;  %vm144_vm9 = vcmp.lt.s32.totalorder %v862_v10, 0  ;;  %vm899_vm10 = vmand %vm142_vm2, %vm134_vm15 }
  0x1c   :  { %v159_v24 = vadd.s32 8, %v115_v6  ;;  %v163_v25 = vsel %vm866_vm3, %v155_v12, %v87_v59  ;;  %v905_v26 = vunpack.c.2.s8 %v28_v5  ;;  %vm137_vm11 = vcmp.ne.s32.totalorder %v873_v15, 0  ;;  %vm911_vm13 = vmand %vm143_vm5, %vm135_vm4 }
  0x1d   :  { %vm145_vm12 = vcmp.lt.s32.totalorder %v873_v15, 0  ;;  %v164_v29 = vsel %vm877_vm6, %v156_v13, %v94_v62  ;;  %v160_v30 = vadd.s32 8, %v862_v10  ;;  %vm170_vm14 = vcmp.eq.s32.totalorder %v827_v23, %v162_v21  ;;  %vm928_vm1 = vmand %vm144_vm9, %vm136_vm8 }
  0x1e   :  { %vm178_vm15 = vcmp.ge.s32.totalorder %v827_v23, 0  ;;  %vm179_vm0 = vcmp.ge.s32.totalorder %v830_v27, 0  ;;  %v161_v34 = vadd.s32 8, %v873_v15  ;;  %v165_v35 = vsel %vm885_vm7, %v157_v19, %v845_v63  ;;  %vm944_vm3 = vmand %vm145_vm12, %vm137_vm11 }
  0x1f   :  { %v166_v36 = vsel %vm899_vm10, %v158_v20, %v848_v0  ;;  %vm171_vm2 = vcmp.eq.s32.totalorder %v830_v27, %v163_v25  ;;  %v940_v37 = vunpack.c.3.s8 %v28_v5  ;;  %v167_v39 = vsel %vm911_vm13, %v159_v24, %v115_v6  ;;  %vm956_vm6 = vmand %vm170_vm14, %vm178_vm15 }
  0x20   :  { %vm951_vm4 = vcmp.eq.s32.totalorder %v835_v31, %v164_v29  ;;  %vm180_vm5 = vcmp.ge.s32.totalorder %v835_v31, 0  ;;  %v168_v43 = vsel %vm928_vm1, %v160_v30, %v862_v10  ;;  %vm969_vm7 = vcmp.eq.s32.totalorder %v841_v58, %v165_v35  ;;  %vm980_vm9 = vmand %vm171_vm2, %vm179_vm0 }
  0x21   :  { %vm974_vm8 = vcmp.eq.s32.totalorder %v870_v14, %v166_v36  ;;  %v226_v47 = vand.u32 2147483647, %v924_v32  ;;  %v169_v50 = vsel %vm944_vm3, %v161_v34, %v873_v15  ;;  %vm999_vm10 = vcmp.eq.s32.totalorder %v881_v17, %v167_v39  ;;  %vm188_vm13 = vmand %vm951_vm4, %vm180_vm5  ;;  %v1126_v39 = vld [vmem:[%s1673_s2] sm:$0xff] }
  0x22   :  { %vm181_vm11 = vcmp.ge.s32.totalorder %v841_v58, 0  ;;  %vm182_vm12 = vcmp.ge.s32.totalorder %v870_v14, 0  ;;  %vm183_vm14 = vcmp.ge.s32.totalorder %v881_v17, 0  ;;  %vm184_vm15 = vcmp.ge.s32.totalorder %v905_v26, 0  ;;  %1743 = vst [vmem:[#allocation7_spill] sm:$0xff] %v1126_v39 }
  0x23   :  { %vm185_vm0 = vcmp.ge.s32.totalorder %v940_v37, 0  ;;  %v1677_v54 = vmov 0.0   ;;  %vm202_vm1 = vcmp.ne.s32.totalorder %v827_v23, 4294967294  ;;  %vm203_vm2 = vcmp.ne.s32.totalorder %v830_v27, 4294967294  ;;  %vm1073_vm5 = vmand %vm974_vm8, %vm182_vm12 }
  0x24   :  { %v1023_v55 = vsel %vm956_vm6, 1.0, %v1677_v54  ;;  %v1038_v59 = vsel %vm980_vm9, 1.0, %v1677_v54  ;;  %vm204_vm3 = vcmp.ne.s32.totalorder %v835_v31, 4294967294  ;;  %v1044_v60 = vsel %vm188_vm13, 1.0, %v1677_v54  ;;  %vm189_vm9 = vmand %vm969_vm7, %vm181_vm11 }
  0x25   :  { %vm205_vm4 = vcmp.ne.s32.totalorder %v841_v58, 4294967294  ;;  %v227_v61 = vand.u32 2147483647, %v963_v42  ;;  %v228_v62 = vand.u32 2147483647, %v988_v48  ;;  %v234_v3 = vsub.f32 0.0, %v226_v47  ;;  %vm1085_vm11 = vmand %vm999_vm10, %vm183_vm14 }
  0x26   :  { %v229_v63 = vand.u32 2147483647, %v993_v49  ;;  %v230_v0 = vand.u32 2147483647, %v1010_v52  ;;  %vm1053_vm6 = vcmp.eq.s32.totalorder %v905_v26, %v168_v43  ;;  %v231_v5 = vand.u32 2147483647, %v1015_v53 }
  0x27   :  { %v232_v6 = vand.u32 2147483647, %v1028_v56  ;;  %v233_v7 = vand.u32 2147483647, %v1033_v57  ;;  %v235_v8 = vsub.f32 0.0, %v227_v61  ;;  %v236_v9 = vsub.f32 0.0, %v228_v62 }
  0x28   :  { %v237_v10 = vsub.f32 0.0, %v229_v63  ;;  %v238_v11 = vsub.f32 0.0, %v230_v0  ;;  %v239_v12 = vsub.f32 0.0, %v231_v5  ;;  %v242_v16 = vmul.f32 1.442695, %v234_v3 }
  0x29   :  { %v240_v13 = vsub.f32 0.0, %v232_v6  ;;  %v241_v15 = vsub.f32 0.0, %v233_v7  ;;  %vm1065_vm13 = vcmp.eq.s32.totalorder %v940_v37, %v169_v50  ;;  %v244_v20 = vmul.f32 1.442695, %v235_v8 }
  0x2a   :  { %v246_v21 = vmul.f32 1.442695, %v236_v9  ;;  %v248_v22 = vmul.f32 1.442695, %v237_v10  ;;  %v1078_v24 = vsel %vm189_vm9, 1.0, %v1677_v54  ;;  %vm207_vm7 = vcmp.ne.s32.totalorder %v881_v17, 4294967294  ;;  %vm1095_vm9 = vmand %vm1053_vm6, %vm184_vm15 }
  0x2b   :  { %712 = vpow2.f32 %v242_v16  ;;  %v250_v25 = vmul.f32 1.442695, %v238_v11  ;;  %vm208_vm8 = vcmp.ne.s32.totalorder %v905_v26, 4294967294  ;;  %vm209_vm12 = vcmp.ne.s32.totalorder %v940_v37, 4294967294  ;;  %vm193_vm10 = vmand %vm1065_vm13, %vm185_vm0 }
  0x2c   :  { %714 = vpow2.f32 %v244_v20  ;;  %v252_v29 = vmul.f32 1.442695, %v239_v12  ;;  %v1102_v33 = vsel %vm1073_vm5, 1.0, %v1677_v54  ;;  %v1107_v34 = vsel %vm202_vm1, 1.0, %v1677_v54 }
  0x2d   :  { %1740 = vst [vmem:[#allocation4_spill] sm:$0xff] %v1107_v34  ;;  %716 = vpow2.f32 %v246_v21  ;;  %v254_v35 = vmul.f32 1.442695, %v240_v13  ;;  %v1116_v36 = vsel %vm203_vm2, 1.0, %v1677_v54  ;;  %v1121_v38 = vsel %vm204_vm3, 1.0, %v1677_v54 }
  0x2e   :  { %1741 = vst [vmem:[#allocation5_spill] sm:$0xff] %v1116_v36  ;;  %1742 = vst [vmem:[#allocation6_spill] sm:$0xff] %v1121_v38  ;;  %718 = vpow2.f32 %v248_v22  ;;  %v256_v23 = vmul.f32 1.442695, %v241_v15  ;;  %v1136_v27 = vsel %vm1085_vm11, 1.0, %v1677_v54  ;;  %v1141_v31 = vsel %vm205_vm4, 1.0, %v1677_v54 }
  0x2f   :  { %1745 = vst [vmem:[#allocation9_spill] sm:$0xff] %v1141_v31  ;;  %vm1746_vm14 = vcmp.ne.s32.totalorder %v870_v14, 4294967294  ;;  %720 = vpow2.f32 %v250_v25  ;;  %v1151_v43 = vsel %vm1095_vm9, 1.0, %v1677_v54  ;;  %v1156_v44 = vsel %vm207_vm7, 1.0, %v1677_v54 }
  0x30   :  { %v1146_v41 = vsel %vm1746_vm14, 1.0, %v1677_v54  ;;  %1748 = vst [vmem:[#allocation11_spill] sm:$0xff] %v1156_v44  ;;  %v1161_v58 = vsel %vm208_vm8, 1.0, %v1677_v54  ;;  %722 = vpow2.f32 %v252_v29  ;;  %v1164_v14 = vsel %vm193_vm10, 1.0, %v1677_v54 }
  0x31   :  { %1747 = vst [vmem:[#allocation10_spill] sm:$0xff] %v1146_v41  ;;  %1749 = vst [vmem:[#allocation12_spill] sm:$0xff] %v1161_v58  ;;  %v1169_v45 = vsel %vm209_vm12, 1.0, %v1677_v54  ;;  %724 = vpow2.f32 %v254_v35  ;;  %v1686_v46 = vsub.f32 1.0, %v1023_v55  ;;  %v1685_v26 = vsub.f32 1.0, %v1038_v59 }
  0x32   :  { %1750 = vst [vmem:[#allocation13_spill] sm:$0xff] %v1169_v45  ;;  %726 = vpow2.f32 %v256_v23  ;;  %v1684_v47 = vsub.f32 1.0, %v1044_v60  ;;  %v1682_v50 = vsub.f32 1.0, %v1078_v24  ;;  %v1681_v51 = vsub.f32 1.0, %v1102_v33 }
  0x33   :  { %v1680_v61 = vsub.f32 1.0, %v1136_v27  ;;  %v1679_v37 = vsub.f32 1.0, %v1151_v43  ;;  %v1683_v62 = vsub.f32 1.0, %v1164_v14  ;;  %v346_v63 = vmul.f32 0.25, %v1023_v55 }
  0x34   :  { %v347_v0 = vmul.f32 0.25, %v1038_v59  ;;  %v348_v3 = vmul.f32 0.25, %v1044_v60  ;;  %v349_v5 = vmul.f32 0.25, %v1078_v24  ;;  %v350_v6 = vmul.f32 0.25, %v1102_v33 }
  0x35   :  { %v1184_v4 = vpop.eup %712  ;;  %v351_v7 = vmul.f32 0.25, %v1136_v27  ;;  %v354_v8 = vmul.f32 0.75, %v1686_v46  ;;  %v352_v11 = vmul.f32 0.25, %v1151_v43  ;;  %v353_v12 = vmul.f32 0.25, %v1164_v14 }
  0x36   :  { %v1191_v9 = vpop.eup %714  ;;  %v1194_v10 = vadd.f32 1.0, %v1184_v4  ;;  %v355_v13 = vmul.f32 0.75, %v1685_v26  ;;  %v356_v18 = vmul.f32 0.75, %v1684_v47  ;;  %v357_v19 = vmul.f32 0.75, %v1682_v50 }
  0x37   :  { %v1200_v15 = vpop.eup %716  ;;  %v1203_v16 = vadd.f32 1.0, %v1191_v9  ;;  %v358_v20 = vmul.f32 0.75, %v1681_v51  ;;  %v359_v25 = vmul.f32 0.75, %v1680_v61  ;;  %v360_v28 = vmul.f32 0.75, %v1679_v37 }
  0x38   :  { %v1211_v21 = vpop.eup %718  ;;  %v1214_v22 = vadd.f32 1.0, %v1200_v15  ;;  %728 = vrcp.f32 %v1194_v10  ;;  %v361_v35 = vmul.f32 0.75, %v1683_v62  ;;  %v1229_v23 = vadd.f32 %v354_v8, %v346_v63 }
  0x39   :  { %v1221_v29 = vpop.eup %720  ;;  %v1224_v30 = vadd.f32 1.0, %v1211_v21  ;;  %730 = vrcp.f32 %v1203_v16  ;;  %vm282_vm15 = vcmp.ge.f32.partialorder %v924_v32, 0.0  ;;  %v1238_v37 = vadd.f32 %v355_v13, %v347_v0 }
  0x3a   :  { %1751 = vst [vmem:[#allocation14_spill] sm:$0xff] %v1229_v23  ;;  %v1231_v54 = vpop.eup %722  ;;  %v1234_v17 = vadd.f32 1.0, %v1221_v29  ;;  %732 = vrcp.f32 %v1214_v22  ;;  %v442_v61 = vmul.f32 0.9, %v1023_v55  ;;  %vm283_vm0 = vcmp.ge.f32.partialorder %v963_v42, 0.0 }
  0x3b   :  { %1752 = vst [vmem:[#allocation15_spill] sm:$0xff] %v1231_v54  ;;  %1753 = vst [vmem:[#allocation16_spill] sm:$0xff] %v1238_v37  ;;  %v1241_v51 = vpop.eup %724  ;;  %v1244_v50 = vadd.f32 1.0, %v1231_v54  ;;  %734 = vrcp.f32 %v1224_v30  ;;  %v443_v63 = vmul.f32 0.9, %v1038_v59  ;;  %vm284_vm1 = vcmp.ge.f32.partialorder %v988_v48, 0.0 }
  0x3c   :  { %1754 = vst [vmem:[#allocation17_spill] sm:$0xff] %v1241_v51  ;;  %v444_v8 = vmul.f32 0.9, %v1044_v60  ;;  %v1250_v62 = vpop.eup %726  ;;  %v1253_v0 = vadd.f32 1.0, %v1241_v51  ;;  %736 = vrcp.f32 %v1234_v17  ;;  %v445_v13 = vmul.f32 0.9, %v1078_v24 }
  0x3d   :  { %1755 = vst [vmem:[#allocation18_spill] sm:$0xff] %v1250_v62  ;;  %v446_v47 = vmul.f32 0.9, %v1102_v33  ;;  %v1260_v26 = vadd.f32 1.0, %v1250_v62  ;;  %738 = vrcp.f32 %v1244_v50  ;;  %vm285_vm2 = vcmp.ge.f32.partialorder %v993_v49, 0.0 }
  0x3e   :  { %1756 = vst [vmem:[#allocation19_spill] sm:$0xff] %v1253_v0  ;;  %v447_v46 = vmul.f32 0.9, %v1136_v27  ;;  %v448_v2 = vmul.f32 0.9, %v1151_v43  ;;  %740 = vrcp.f32 %v1253_v0  ;;  %vm286_vm3 = vcmp.ge.f32.partialorder %v1010_v52, 0.0 }
  0x3f   :  { %1757 = vst [vmem:[#allocation20_spill] sm:$0xff] %v1260_v26  ;;  %v1268_v1 = vadd.f32 %v356_v18, %v348_v3  ;;  %v1270_v45 = vadd.f32 %v357_v19, %v349_v5  ;;  %v449_v39 = vmul.f32 0.9, %v1164_v14  ;;  %742 = vrcp.f32 %v1260_v26 }
  0x40   :  { %vm287_vm4 = vcmp.ge.f32.partialorder %v1015_v53, 0.0  ;;  %v1275_v58 = vadd.f32 %v358_v20, %v350_v6  ;;  %v1277_v44 = vadd.f32 %v359_v25, %v351_v7  ;;  %v450_v41 = vadd.f32 0.05, %v442_v61 }
  0x41   :  { %1758 = vst [vmem:[#allocation21_spill] sm:$0xff] %v1268_v1  ;;  %1759 = vst [vmem:[#allocation22_spill] sm:$0xff] %v1270_v45  ;;  %vm288_vm5 = vcmp.ge.f32.partialorder %v1028_v56, 0.0  ;;  %v1280_v40 = vadd.f32 %v360_v28, %v352_v11  ;;  %v451_v31 = vadd.f32 0.05, %v443_v63  ;;  %vm289_vm6 = vcmp.ge.f32.partialorder %v1033_v57, 0.0 }
  0x42   :  { %1760 = vst [vmem:[#allocation23_spill] sm:$0xff] %v1275_v58  ;;  %1761 = vst [vmem:[#allocation24_spill] sm:$0xff] %v1277_v44  ;;  %v452_v3 = vadd.f32 0.05, %v444_v8  ;;  %v1282_v18 = vadd.f32 0.05, %v445_v13  ;;  %v1285_v5 = vadd.f32 %v361_v35, %v353_v12  ;;  %v729_v7 = vpop.eup %728  ;;  %v1304_v13 = vmul.f32 %v450_v41, %v924_v32 }
  0x43   :  { %1762 = vst [vmem:[#allocation25_spill] sm:$0xff] %v1280_v40  ;;  %v1287_v19 = vadd.f32 0.05, %v446_v47  ;;  %v1289_v38 = vadd.f32 0.05, %v447_v46  ;;  %v731_v28 = vpop.eup %730  ;;  %v290_v63 = vsub.f32 1.0, %v729_v7  ;;  %v1309_v12 = vmul.f32 %v451_v31, %v963_v42 }
  0x44   :  { %1763 = vst [vmem:[#allocation26_spill] sm:$0xff] %v1285_v5  ;;  %v1291_v6 = vadd.f32 0.05, %v448_v2  ;;  %v1293_v61 = vadd.f32 0.05, %v449_v39  ;;  %v733_v35 = vpop.eup %732  ;;  %v291_v2 = vsub.f32 1.0, %v731_v28  ;;  %v1312_v47 = vmul.f32 %v452_v3, %v988_v48 }
  0x45   :  { %v735_v20 = vpop.eup %734  ;;  %v292_v11 = vsub.f32 1.0, %v733_v35  ;;  %v298_v25 = vsel %vm282_vm15, %v729_v7, %v290_v63  ;;  %v1764_v62 = vsub.f32 1.0, %v1023_v55 }
  0x46   :  { %v737_v46 = vpop.eup %736  ;;  %v293_v5 = vsub.f32 1.0, %v735_v20  ;;  %v299_v8 = vsel %vm283_vm0, %v731_v28, %v291_v2  ;;  %v314_v39 = vmul.f32 %v298_v25, %v1023_v55  ;;  %v322_v41 = vsub.f32 1.0, %v298_v25 }
  0x47   :  { %v739_v40 = vpop.eup %738  ;;  %v294_v36 = vsub.f32 1.0, %v737_v46  ;;  %v300_v34 = vsel %vm284_vm1, %v733_v35, %v292_v11  ;;  %v315_v7 = vmul.f32 %v299_v8, %v1038_v59  ;;  %v323_v31 = vsub.f32 1.0, %v299_v8 }
  0x48   :  { %v741_v63 = vpop.eup %740  ;;  %v295_v44 = vsub.f32 1.0, %v739_v40  ;;  %v301_v3 = vsel %vm285_vm2, %v735_v20, %v293_v5  ;;  %v316_v58 = vmul.f32 %v300_v34, %v1044_v60  ;;  %v324_v45 = vsub.f32 1.0, %v300_v34 }
  0x49   :  { %v743_v28 = vpop.eup %742  ;;  %v296_v2 = vsub.f32 1.0, %v741_v63  ;;  %v302_v25 = vsel %vm286_vm3, %v737_v46, %v294_v36  ;;  %v317_v1 = vmul.f32 %v301_v3, %v1078_v24  ;;  %v325_v37 = vsub.f32 1.0, %v301_v3 }
  0x4a   :  { %v297_v11 = vsub.f32 1.0, %v743_v28  ;;  %v303_v35 = vsel %vm287_vm4, %v739_v40, %v295_v44  ;;  %v318_v8 = vmul.f32 %v302_v25, %v1102_v33  ;;  %v326_v23 = vsub.f32 1.0, %v302_v25 }
  0x4b   :  { %v304_v5 = vsel %vm288_vm5, %v741_v63, %v296_v2  ;;  %v319_v34 = vmul.f32 %v303_v35, %v1136_v27  ;;  %v327_v20 = vsub.f32 1.0, %v303_v35  ;;  %v330_v26 = vmul.f32 %v322_v41, %v1764_v62 }
  0x4c   :  { %v305_v36 = vsel %vm289_vm6, %v743_v28, %v297_v11  ;;  %v320_v46 = vmul.f32 %v304_v5, %v1151_v43  ;;  %v328_v3 = vsub.f32 1.0, %v304_v5  ;;  %v1765_v40 = vsub.f32 1.0, %v1038_v59 }
  0x4d   :  { %v321_v25 = vmul.f32 %v305_v36, %v1164_v14  ;;  %v329_v51 = vsub.f32 1.0, %v305_v36  ;;  %v1766_v63 = vsub.f32 1.0, %v1044_v60  ;;  %v1767_v35 = vsub.f32 1.0, %v1078_v24 }
  0x4e   :  { %v331_v44 = vmul.f32 %v323_v31, %v1765_v40  ;;  %v1768_v55 = vsub.f32 1.0, %v1102_v33  ;;  %v1769_v41 = vsub.f32 1.0, %v1136_v27  ;;  %v1770_v11 = vsub.f32 1.0, %v1151_v43 }
  0x4f   :  { %v332_v2 = vmul.f32 %v324_v45, %v1766_v63  ;;  %v333_v0 = vmul.f32 %v325_v37, %v1767_v35  ;;  %v338_v59 = vadd.f32 %v330_v26, %v314_v39  ;;  %v1771_v31 = vsub.f32 1.0, %v1164_v14 }
  0x50   :  { %v334_v62 = vmul.f32 %v326_v23, %v1768_v55  ;;  %v335_v28 = vmul.f32 %v327_v20, %v1769_v41  ;;  %v336_v5 = vmul.f32 %v328_v3, %v1770_v11  ;;  %v339_v36 = vadd.f32 %v331_v44, %v315_v7 }
  0x51   :  { %v337_v40 = vmul.f32 %v329_v51, %v1771_v31  ;;  %v340_v54 = vadd.f32 %v332_v2, %v316_v58  ;;  %v341_v60 = vadd.f32 %v333_v0, %v317_v1  ;;  %v1352_v24 = vsub.f32 1.0, %v338_v59 }
  0x52   :  { %v342_v45 = vadd.f32 %v334_v62, %v318_v8  ;;  %v343_v63 = vadd.f32 %v335_v28, %v319_v34  ;;  %v469_v33 = vmul.f32 %v1282_v18, %v993_v49  ;;  %v344_v37 = vadd.f32 %v336_v5, %v320_v46 }
  0x53   :  { %v1356_v27 = vsub.f32 1.0, %v339_v36  ;;  %v1358_v23 = vsub.f32 1.0, %v340_v54  ;;  %v470_v43 = vmul.f32 %v1287_v19, %v1010_v52  ;;  %v345_v14 = vadd.f32 %v337_v40, %v321_v25 }
  0x54   :  { %v1362_v26 = vsub.f32 1.0, %v341_v60  ;;  %744 = vrsqrt.f32 %v1352_v24  ;;  %v471_v1 = vmul.f32 %v1289_v38, %v1015_v53  ;;  %v1367_v58 = vsub.f32 1.0, %v342_v45 }
  0x55   :  { %v1371_v51 = vmul.f32 %v1291_v6, %v1028_v56  ;;  %v1375_v54 = vmul.f32 %v1293_v61, %v1033_v57  ;;  %v1772_v0 = vmax.f32 %v924_v32, 0.0  ;;  %v1382_v19 = vsub.f32 1.0, %v343_v63 }
  0x56   :  { %746 = vrsqrt.f32 %v1356_v27  ;;  %v1773_v38 = vmax.f32 %v963_v42, 0.0  ;;  %v1774_v6 = vmax.f32 %v988_v48, 0.0  ;;  %v1395_v61 = vsub.f32 1.0, %v344_v37 }
  0x57   :  { %v1380_v18 = vsub.f32 %v1772_v0, %v1304_v13  ;;  %748 = vrsqrt.f32 %v1358_v23  ;;  %v1775_v32 = vmax.f32 %v993_v49, 0.0  ;;  %v1776_v8 = vmax.f32 %v1010_v52, 0.0  ;;  %v1789_v0 = vld [vmem:[#allocation19_spill] sm:$0xff] }
  0x58   :  { %v1388_v39 = vsub.f32 %v1773_v38, %v1309_v12  ;;  %v1393_v7 = vsub.f32 %v1774_v6, %v1312_v47  ;;  %v1406_v42 = vsub.f32 1.0, %v345_v14  ;;  %vm380_vm13 = vcmp.eq.f32.partialorder %v1352_v24, inf }
  0x59   :  { %v1400_v13 = vsub.f32 %v1775_v32, %v469_v33  ;;  %v1404_v34 = vsub.f32 %v1776_v8, %v470_v43  ;;  %750 = vrsqrt.f32 %v1362_v26  ;;  %v1777_v48 = vmax.f32 %v1015_v53, 0.0 }
  0x5a   :  { %vm382_vm7 = vcmp.eq.f32.partialorder %v1352_v24, 0.0  ;;  %v383_v49 = vand.u32 2147483648, %v1352_v24  ;;  %vm387_vm11 = vcmp.eq.f32.partialorder %v1356_v27, inf  ;;  %752 = vrsqrt.f32 %v1367_v58 }
  0x5b   :  { %v1412_v12 = vsub.f32 %v1777_v48, %v471_v1  ;;  %v390_v52 = vand.u32 2147483648, %v1356_v27  ;;  %vm394_vm8 = vcmp.eq.f32.partialorder %v1358_v23, inf  ;;  %v397_v47 = vand.u32 2147483648, %v1358_v23 }
  0x5c   :  { %754 = vrsqrt.f32 %v1382_v19  ;;  %vm389_vm12 = vcmp.eq.f32.partialorder %v1356_v27, 0.0  ;;  %vm396_vm9 = vcmp.eq.f32.partialorder %v1358_v23, 0.0  ;;  %vm401_vm10 = vcmp.eq.f32.partialorder %v1362_v26, inf }
  0x5d   :  { %v404_v53 = vand.u32 2147483648, %v1362_v26  ;;  %vm408_vm14 = vcmp.eq.f32.partialorder %v1367_v58, inf  ;;  %756 = vrsqrt.f32 %v1395_v61  ;;  %vm403_vm15 = vcmp.eq.f32.partialorder %v1362_v26, 0.0 }
  0x5e   :  { %vm410_vm0 = vcmp.eq.f32.partialorder %v1367_v58, 0.0  ;;  %v411_v20 = vand.u32 2147483648, %v1367_v58  ;;  %vm415_vm1 = vcmp.eq.f32.partialorder %v1382_v19, inf  ;;  %v418_v46 = vand.u32 2147483648, %v1382_v19  ;;  %v745_v25 = vpop.eup %744 }
  0x5f   :  { %758 = vrsqrt.f32 %v1406_v42  ;;  %vm417_vm2 = vcmp.eq.f32.partialorder %v1382_v19, 0.0  ;;  %vm422_vm3 = vcmp.eq.f32.partialorder %v1395_v61, inf  ;;  %v425_v3 = vand.u32 2147483648, %v1395_v61 }
  0x60   :  { %760 = vlog2.f32 %v1194_v10  ;;  %v485_v44 = vmul.f32 -0.5, %v1184_v4  ;;  %vm424_vm4 = vcmp.eq.f32.partialorder %v1395_v61, 0.0  ;;  %vm429_vm5 = vcmp.eq.f32.partialorder %v1406_v42, inf  ;;  %v747_v41 = vpop.eup %746 }
  0x61   :  { %v488_v2 = vand.u32 2147483647, %v1184_v4  ;;  %762 = vlog2.f32 %v1203_v16  ;;  %v494_v35 = vmul.f32 -0.5, %v1191_v9  ;;  %v379_v55 = vmul.f32 %v745_v25, %v1352_v24  ;;  %v749_v5 = vpop.eup %748 }
  0x62   :  { %v486_v62 = vadd.f32 1.0, %v485_v44  ;;  %764 = vlog2.f32 %v1214_v22  ;;  %v503_v10 = vmul.f32 -0.5, %v1200_v15  ;;  %vm431_vm6 = vcmp.eq.f32.partialorder %v1406_v42, 0.0 }
  0x63   :  { %v495_v28 = vadd.f32 1.0, %v494_v35  ;;  %v497_v11 = vand.u32 2147483647, %v1191_v9  ;;  %766 = vlog2.f32 %v1224_v30  ;;  %v381_v16 = vsel %vm380_vm13, %v1352_v24, %v379_v55  ;;  %v751_v40 = vpop.eup %750 }
  0x64   :  { %v386_v59 = vmul.f32 %v747_v41, %v1356_v27  ;;  %v432_v31 = vand.u32 2147483648, %v1406_v42  ;;  %v504_v22 = vadd.f32 1.0, %v503_v10  ;;  %v384_v36 = vsel %vm382_vm7, %v383_v49, %v381_v16  ;;  %v753_v37 = vpop.eup %752 }
  0x65   :  { %v393_v60 = vmul.f32 %v749_v5, %v1358_v23  ;;  %v1778_v45 = vmax.f32 %v1028_v56, 0.0  ;;  %v1779_v63 = vmax.f32 %v1033_v57, 0.0  ;;  %v400_v14 = vmul.f32 %v751_v40, %v1362_v26 }
  0x66   :  { %v388_v43 = vsel %vm387_vm11, %v1356_v27, %v386_v59  ;;  %v1473_v1 = vmul.f32 %v1184_v4, %v486_v62  ;;  %vm1475_vm13 = vcmp.lt.f32.partialorder %v488_v2, 0.0004427343  ;;  %v755_v56 = vpop.eup %754  ;;  %vm1486_vm7 = vcmp.lt.f32.partialorder %v497_v11, 0.0004427343 }
  0x67   :  { %v1461_v30 = vsub.f32 %v1778_v45, %v1371_v51  ;;  %v1466_v33 = vsub.f32 %v1779_v63, %v1375_v54  ;;  %v395_v57 = vsel %vm394_vm8, %v1358_v23, %v393_v60  ;;  %v407_v51 = vmul.f32 %v753_v37, %v1367_v58  ;;  %v757_v6 = vpop.eup %756 }
  0x68   :  { %v1484_v54 = vmul.f32 %v1191_v9, %v495_v28  ;;  %v506_v4 = vand.u32 2147483647, %v1200_v15  ;;  %v402_v32 = vsel %vm401_vm10, %v1362_v26, %v400_v14  ;;  %v414_v8 = vmul.f32 %v755_v56, %v1382_v19  ;;  %v603_v14 = vld [vmem:[%s1673_s2 + $0x8] sm:$0xff] }
  0x69   :  { %v1496_v48 = vmul.f32 %v384_v36, %v1352_v24  ;;  %v505_v49 = vmul.f32 %v1200_v15, %v504_v22  ;;  %v759_v9 = vpop.eup %758  ;;  %v391_v44 = vsel %vm389_vm12, %v390_v52, %v388_v43  ;;  %v398_v25 = vsel %vm396_vm9, %v397_v47, %v395_v57  ;;  %v1790_v57 = vld [vmem:[#allocation17_spill] sm:$0xff] }
  0x6a   :  { %v409_v2 = vsel %vm408_vm14, %v1367_v58, %v407_v51  ;;  %v421_v24 = vmul.f32 %v757_v6, %v1395_v61  ;;  %v761_v35 = vpop.eup %760  ;;  %v405_v15 = vsel %vm403_vm15, %v404_v53, %v402_v32  ;;  %v416_v52 = vsel %vm415_vm1, %v1382_v19, %v414_v8  ;;  %v1791_v32 = vld [vmem:[#allocation20_spill] sm:$0xff] }
  0x6b   :  { %v412_v55 = vsel %vm410_vm0, %v411_v20, %v409_v2  ;;  %v428_v62 = vmul.f32 %v759_v9, %v1406_v42  ;;  %v763_v47 = vpop.eup %762  ;;  %v419_v10 = vsel %vm417_vm2, %v418_v46, %v416_v52  ;;  %v484_v28 = vmul.f32 0.6931472, %v761_v35  ;;  %v1814_v52 = vld [vmem:[#allocation10_spill] sm:$0xff] }
  0x6c   :  { %v423_v41 = vsel %vm422_vm3, %v1395_v61, %v421_v24  ;;  %vm1524_vm11 = vcmp.lt.f32.partialorder %v506_v4, 0.0004427343  ;;  %v765_v20 = vpop.eup %764  ;;  %v435_v16 = vmul.f32 %v391_v44, %v1356_v27  ;;  %v436_v46 = vmul.f32 %v398_v25, %v1358_v23 }
  0x6d   :  { %v426_v11 = vsel %vm424_vm4, %v425_v3, %v423_v41  ;;  %v430_v5 = vsel %vm429_vm5, %v1406_v42, %v428_v62  ;;  %v767_v59 = vpop.eup %766  ;;  %v437_v22 = vmul.f32 %v405_v15, %v1362_v26  ;;  %v438_v40 = vmul.f32 %v412_v55, %v1367_v58  ;;  %v1797_v62 = vld [vmem:[#allocation14_spill] sm:$0xff] }
  0x6e   :  { %v439_v36 = vmul.f32 %v419_v10, %v1382_v19  ;;  %v493_v60 = vmul.f32 0.6931472, %v763_v47  ;;  %v433_v45 = vsel %vm431_vm6, %v432_v31, %v430_v5  ;;  %v440_v3 = vmul.f32 %v426_v11, %v1395_v61  ;;  %v1786_v31 = vld [vmem:[#allocation15_spill] sm:$0xff]  ;;  %v1798_v10 = vld [vmem:[#allocation16_spill] sm:$0xff] }
  0x6f   :  { %v490_v63 = vsel %vm1475_vm13, %v1473_v1, %v484_v28  ;;  %v512_v27 = vmul.f32 -0.5, %v1211_v21  ;;  %v502_v23 = vmul.f32 0.6931472, %v765_v20  ;;  %v515_v37 = vand.u32 2147483647, %v1211_v21  ;;  %v1799_v28 = vld [vmem:[#allocation21_spill] sm:$0xff] }
  0x70   :  { %768 = vlog2.f32 %v1234_v17  ;;  %v521_v26 = vmul.f32 -0.5, %v1221_v29  ;;  %v511_v58 = vmul.f32 0.6931472, %v767_v59  ;;  %v530_v43 = vmul.f32 -0.5, %v1786_v31 }
  0x71   :  { %v513_v19 = vadd.f32 1.0, %v512_v27  ;;  %770 = vlog2.f32 %v1244_v50  ;;  %v1551_v61 = vmul.f32 %v433_v45, %v1406_v42  ;;  %vm1553_vm8 = vcmp.lt.f32.partialorder %v515_v37, 0.0004427343 }
  0x72   :  { %v524_v1 = vand.u32 2147483647, %v1221_v29  ;;  %772 = vlog2.f32 %v1789_v0  ;;  %v499_v17 = vsel %vm1486_vm7, %v1484_v54, %v493_v60  ;;  %v522_v50 = vadd.f32 1.0, %v521_v26  ;;  %v1792_v54 = vld [vmem:[#allocation18_spill] sm:$0xff]  ;;  %v1805_v60 = vld [vmem:[#allocation23_spill] sm:$0xff]  ;;  %v1806_v26 = vld [vmem:[#allocation24_spill] sm:$0xff] }
  0x73   :  { %v514_v56 = vmul.f32 %v1211_v21, %v513_v19  ;;  %v539_v51 = vmul.f32 -0.5, %v1790_v57  ;;  %v508_v42 = vsel %vm1524_vm11, %v505_v49, %v502_v23  ;;  %v531_v4 = vadd.f32 1.0, %v530_v43  ;;  %v1812_v21 = vld [vmem:[#allocation26_spill] sm:$0xff] }
  0x74   :  { %v533_v6 = vand.u32 2147483647, %v1786_v31  ;;  %774 = vlog2.f32 %v1791_v32  ;;  %v542_v38 = vand.u32 2147483647, %v1790_v57  ;;  %v548_v44 = vmul.f32 -0.5, %v1792_v54 }
  0x75   :  { %v517_v8 = vsel %vm1553_vm8, %v514_v56, %v511_v58  ;;  %v540_v9 = vadd.f32 1.0, %v539_v51  ;;  %vm1572_vm12 = vcmp.lt.f32.partialorder %v524_v1, 0.0004427343  ;;  %v551_v25 = vand.u32 2147483647, %v1792_v54  ;;  %v1612_v1 = vld [vmem:[%s1674_s3 + $0x8] sm:$0xff] }
  0x76   :  { %v554_v49 = vadd.f32 %v490_v63, %v1380_v18  ;;  %v555_v2 = vadd.f32 %v499_v17, %v1388_v39  ;;  %v523_v24 = vmul.f32 %v1221_v29, %v522_v50  ;;  %v549_v35 = vadd.f32 1.0, %v548_v44  ;;  %v1809_v17 = vld [vmem:[#allocation25_spill] sm:$0xff] }
  0x77   :  { %v556_v15 = vadd.f32 %v508_v42, %v1393_v7  ;;  %v557_v55 = vadd.f32 %v517_v8, %v1400_v13  ;;  %vm1582_vm9 = vcmp.lt.f32.partialorder %v533_v6, 0.0004427343  ;;  %v562_v47 = vmul.f32 %v1496_v48, %v1797_v62  ;;  %v1802_v7 = vld [vmem:[#allocation22_spill] sm:$0xff] }
  0x78   :  { %v563_v41 = vmul.f32 %v435_v16, %v1798_v10  ;;  %v564_v18 = vmul.f32 %v436_v46, %v1799_v28  ;;  %v532_v39 = vmul.f32 %v1786_v31, %v531_v4  ;;  %v541_v29 = vmul.f32 %v1790_v57, %v540_v9  ;;  %v1808_v31 = vld [vmem:[#allocation5_spill] sm:$0xff]  ;;  %v1815_v10 = vld [vmem:[#allocation11_spill] sm:$0xff] }
  0x79   :  { %vm1592_vm10 = vcmp.lt.f32.partialorder %v542_v38, 0.0004427343  ;;  %v565_v13 = vmul.f32 %v437_v22, %v1802_v7  ;;  %v550_v11 = vmul.f32 %v1792_v54, %v549_v35  ;;  %vm1598_vm14 = vcmp.lt.f32.partialorder %v551_v25, 0.0004427343  ;;  %v1807_v22 = vld [vmem:[#allocation4_spill] sm:$0xff]  ;;  %v1811_v4 = vld [vmem:[#allocation9_spill] sm:$0xff] }
  0x7a   :  { %v769_v20 = vpop.eup %768  ;;  %v570_v48 = vmul.f32 %v562_v47, %v554_v49  ;;  %v571_v16 = vmul.f32 %v563_v41, %v555_v2  ;;  %v566_v45 = vmul.f32 %v438_v40, %v1805_v60  ;;  %v572_v63 = vmul.f32 %v564_v18, %v556_v15  ;;  %v605_v2 = vld [vmem:[%s1673_s2 + $0x18] sm:$0xff]  ;;  %v1813_v15 = vld [vmem:[#allocation8_spill] sm:$0xff] }
  0x7b   :  { %v771_v46 = vpop.eup %770  ;;  %v520_v59 = vmul.f32 0.6931472, %v769_v20  ;;  %v573_v27 = vmul.f32 %v565_v13, %v557_v55  ;;  %v567_v58 = vmul.f32 %v439_v36, %v1806_v26  ;;  %v568_v56 = vmul.f32 %v440_v3, %v1809_v17  ;;  %v1810_v36 = vld [vmem:[#allocation6_spill] sm:$0xff]  ;;  %v604_v3 = vld [vmem:[%s1673_s2 + $0x10] sm:$0xff]  ;;  %v1817_v13 = vld [vmem:[#allocation7_spill] sm:$0xff] }
  0x7c   :  { %v773_v23 = vpop.eup %772  ;;  %v529_v37 = vmul.f32 0.6931472, %v771_v46  ;;  %v578_v19 = vmul.f32 %v1807_v22, %v570_v48  ;;  %v579_v43 = vmul.f32 %v1808_v31, %v571_v16  ;;  %v580_v50 = vmul.f32 %v1810_v36, %v572_v63  ;;  %v1819_v16 = vld [vmem:[#allocation13_spill] sm:$0xff] }
  0x7d   :  { %v526_v40 = vsel %vm1572_vm12, %v523_v24, %v520_v59  ;;  %v538_v0 = vmul.f32 0.6931472, %v773_v23  ;;  %v581_v6 = vmul.f32 %v1811_v4, %v573_v27  ;;  %v623_v54 = vsub.f32 %v603_v14, %v1612_v1  ;;  %v609_v24 = vld [vmem:[%s1674_s3 + $0x18] sm:$0xff] }
  0x7e   :  { %v775_v57 = vpop.eup %774  ;;  %v535_v51 = vsel %vm1582_vm9, %v532_v39, %v529_v37  ;;  %v558_v42 = vadd.f32 %v526_v40, %v1404_v34  ;;  %v586_v32 = vadd.f32 %v579_v43, %v578_v19  ;;  %v569_v34 = vmul.f32 %v1551_v61, %v1812_v21 }
  0x7f   :  { %v544_v8 = vsel %vm1592_vm10, %v541_v29, %v538_v0  ;;  %v547_v9 = vmul.f32 0.6931472, %v775_v57  ;;  %v559_v38 = vadd.f32 %v535_v51, %v1412_v12  ;;  %v608_v12 = vld [vmem:[%s1674_s3 + $0x10] sm:$0xff]  ;;  %vm610_vm15 = vcmp.ne.f32.partialorder %v1813_v15, 0.0 }
  0x80   :  { %v560_v44 = vadd.f32 %v544_v8, %v1461_v30  ;;  %v574_v25 = vmul.f32 %v566_v45, %v558_v42  ;;  %v587_v49 = vadd.f32 %v586_v32, %v580_v50  ;;  %vm611_vm0 = vcmp.ne.f32.partialorder %v1612_v1, 0.0  ;;  %v1816_v29 = vld [vmem:[#allocation12_spill] sm:$0xff] }
  0x81   :  { %v553_v30 = vsel %vm1598_vm14, %v550_v11, %v547_v9  ;;  %v575_v35 = vmul.f32 %v567_v58, %v559_v38  ;;  %vm612_vm1 = vcmp.ne.f32.partialorder %v608_v12, 0.0  ;;  %v624_v28 = vsub.f32 %v604_v3, %v608_v12 }
  0x82   :  { %v561_v61 = vadd.f32 %v553_v30, %v1466_v33  ;;  %v576_v55 = vmul.f32 %v568_v56, %v560_v44  ;;  %v582_v62 = vmul.f32 %v1814_v52, %v574_v25  ;;  %v588_v47 = vadd.f32 %v587_v49, %v581_v6 }
  0x83   :  { %v583_v41 = vmul.f32 %v1815_v10, %v575_v35  ;;  %v625_v18 = vsub.f32 %v605_v2, %v609_v24  ;;  %v1818_v20 = vsub.f32 %v1817_v13, %v1813_v15  ;;  %v627_v5 = vand.u32 2147483647, %v623_v54 }
  0x84   :  { %v577_v39 = vmul.f32 %v569_v34, %v561_v61  ;;  %v584_v53 = vmul.f32 %v1816_v29, %v576_v55  ;;  %v589_v7 = vadd.f32 %v588_v47, %v582_v62  ;;  %v628_v48 = vand.u32 2147483647, %v624_v28  ;;  %v1821_v29 = vld [vmem:[#allocation2_spill] sm:$0xff] }
  0x85   :  { %v626_v11 = vand.u32 2147483647, %v1818_v20  ;;  %v629_v33 = vand.u32 2147483647, %v625_v18  ;;  %vm613_vm2 = vcmp.ne.f32.partialorder %v609_v24, 0.0  ;;  %v1820_v37 = vmov 0.0  }
  0x86   :  { %v585_v46 = vmul.f32 %v1819_v16, %v577_v39  ;;  %v590_v59 = vadd.f32 %v589_v7, %v583_v41  ;;  %v631_v45 = vmin.f32 %v627_v5, 0.1  ;;  %v632_v63 = vmin.f32 %v628_v48, 0.1 }
  0x87   :  { %v630_v60 = vmin.f32 %v626_v11, 0.1  ;;  %v633_v27 = vmin.f32 %v629_v33, 0.1  ;;  %v703_v26 = vsel %vm610_vm15, 1.0, %v1820_v37  ;;  %v704_v42 = vsel %vm611_vm0, 1.0, %v1820_v37 }
  0x88   :  { %v591_v23 = vadd.f32 %v590_v59, %v584_v53  ;;  %v635_v19 = vsub.f32 %v627_v5, %v631_v45  ;;  %v636_v31 = vsub.f32 %v628_v48, %v632_v63  ;;  %v639_v14 = vmul.f32 0.5, %v631_v45  ;;  %v1822_v53 = vld [vmem:[#allocation3_spill] sm:$0xff] }
  0x89   :  { %v634_v58 = vsub.f32 %v626_v11, %v630_v60  ;;  %v638_v22 = vmul.f32 0.5, %v630_v60  ;;  %v637_v43 = vsub.f32 %v629_v33, %v633_v27  ;;  %v640_v0 = vmul.f32 0.5, %v632_v63 }
  0x8a   :  { %v592_v40 = vadd.f32 %v591_v23, %v585_v46  ;;  %v641_v17 = vmul.f32 0.5, %v633_v27  ;;  %v643_v36 = vmul.f32 %v639_v14, %v631_v45  ;;  %v647_v57 = vmul.f32 0.1, %v635_v19 }
  0x8b   :  { %v642_v56 = vmul.f32 %v638_v22, %v630_v60  ;;  %v646_v50 = vmul.f32 0.1, %v634_v58  ;;  %v648_v51 = vmul.f32 0.1, %v636_v31  ;;  %v644_v4 = vmul.f32 %v640_v0, %v632_v63 }
  0x8c   :  { %593 = vadd.xlane.f32.xlu0 %v592_v40  ;;  %v645_v6 = vmul.f32 %v641_v17, %v633_v27  ;;  %v649_v32 = vmul.f32 0.1, %v637_v43  ;;  %v705_v8 = vsel %vm612_vm1, 1.0, %v1820_v37  ;;  %v651_v38 = vadd.f32 %v647_v57, %v643_v36 }
  0x8d   :  { %v650_v9 = vadd.f32 %v646_v50, %v642_v56  ;;  %v706_v3 = vsel %vm613_vm2, 1.0, %v1820_v37  ;;  %v652_v54 = vadd.f32 %v648_v51, %v644_v4  ;;  %vm670_vm3 = vcmp.eq.s32.totalorder %v1821_v29, 0 }
  0x8e   :  { %v653_v44 = vadd.f32 %v649_v32, %v645_v6  ;;  %v655_v34 = vmul.f32 %v704_v42, %v651_v38  ;;  %vm671_vm4 = vcmp.eq.s32.totalorder %v1822_v53, 0 }
  0x8f   :  { %v654_v21 = vmul.f32 %v703_v26, %v650_v9  ;;  %v656_v25 = vmul.f32 %v705_v8, %v652_v54  ;;  %vm672_vm5 = vmand %vm670_vm3, %vm671_vm4 }
  0x90   :  { %v657_v49 = vmul.f32 %v706_v3, %v653_v44 }
  0x91   :  { %v658_v2 = vadd.f32 %v655_v34, %v654_v21 }
  0x93   :  { %v659_v1 = vadd.f32 %v658_v2, %v656_v25 }
  0x95   :  { %v660_v30 = vadd.f32 %v659_v1, %v657_v49 }
  0x97   :  { %661 = vadd.xlane.f32.xlu0 %v660_v30 }
 0x119   :  { %v594_v35 = vpop.xlane.xlu0 %593 }
 0x11a   :  { %v595_v15 = vrot.slane %v594_v35, 4 }
 0x11c   :  { %v596_v61 = vadd.f32 %v595_v15, %v594_v35 }
 0x11e   :  { %v597_v12 = vrot.slane %v596_v61, 2 }
 0x120   :  { %v598_v55 = vadd.f32 %v597_v12, %v596_v61 }
 0x122   :  { %v599_v52 = vrot.slane %v598_v55, 1 }
 0x124   :  { %v662_v62 = vpop.xlane.xlu0 %661  ;;  %v600_v47 = vadd.f32 %v599_v52, %v598_v55 }
 0x125   :  { %v663_v24 = vrot.slane %v662_v62, 4 }
 0x126   :  { %707 = vpush %v600_v47 }
 0x127   :  { %v664_v10 = vadd.f32 %v663_v24, %v662_v62 }
 0x129   :  { %v665_v41 = vrot.slane %v664_v10, 2 }
 0x12b   :  { %v666_v28 = vadd.f32 %v665_v41, %v664_v10 }
 0x12d   :  { %v667_v18 = vrot.slane %v666_v28, 1 }
 0x12f   :  { %v668_v39 = vadd.f32 %v667_v18, %v666_v28 }
 0x131   :  { %709 = vpush %v668_v39 }
 0x157   :  { %s708_s2 = spop %707 }
 0x158   :  { %v673_v7 = vstv %s708_s2 }
 0x159   :  { %v674_v13 = vsel %vm672_vm5, %v673_v7, 0.0 }
 0x15a   :  { %675 = vst [vmem:[%s1675_s4] sm:$0xff] %v674_v13 }
 0x162   :  { %s710_s27 = spop %709 }
 0x163   :  { %v676_v20 = vstv %s710_s27 }
 0x164   :  { %v677_v11 = vsel %vm672_vm5, %v676_v20, 0.0 }
 0x165   :  { %678 = vst [vmem:[%s1676_s5] sm:$0xff] %v677_v11 }

</bundles_post_ra>
